<compile_context>
chip_gen: v7x
topology: tpu7x:2x2x1
jax: 0.10.0
libtpu: 0.0.40
codegen_flags: <defaults>
</compile_context>

<pallas_src>
import jax
import jax.numpy as jnp
from jax.experimental import pallas as pl
from jax.experimental.pallas import tpu as pltpu


# ---------------------------------------------------------------------------
# Fused kernel: per-block input projection + LSTM recurrence + FC epilogue.
# ---------------------------------------------------------------------------
def fused_lstm_fc_kernel(x_ref, wih_ref, whh_ref, b_ref, wfc_ref, bfc_ref,
                         y_ref, h_s, c_s, h_blk):
    """One (batch-shard, T-block) grid step.

    x_ref:   (t_blk, BS, I)   input slab for this block
    wih_ref: (I, 4H)          resident input->gates weight (transposed)
    whh_ref: (H, 4H)          resident hidden->gates weight (transposed)
    b_ref:   (1, 4H)          resident b_ih + b_hh
    wfc_ref: (H, O)           resident FC weight (transposed)
    bfc_ref: (1, O)           resident FC bias
    y_ref:   (t_blk, BS, O)   fused output block
    h_s,c_s: (BS, H)          recurrent state, persists across T-blocks
    h_blk:   (t_blk*BS, H)    per-block hidden rows (VMEM only, never HBM)
    """
    t_blk, BS, I = x_ref.shape
    H = whh_ref.shape[0]
    O = wfc_ref.shape[1]

    @pl.when(pl.program_id(1) == 0)          # start of this shard's time loop
    def _():
        h_s[...] = jnp.zeros_like(h_s)
        c_s[...] = jnp.zeros_like(c_s)

    # (1) Hoisted per-block input projection: one lane-dense MXU matmul,
    #     independent of h (off the serial critical path).
    x2 = x_ref[...].reshape(t_blk * BS, I)
    p = jnp.dot(x2, wih_ref[...], preferred_element_type=jnp.float32) + b_ref[...]

    # (2) Serial recurrence: only h @ W_hh^T + elementwise gate math per step.
    h = h_s[...]
    c = c_s[...]
    # TODO(synk): at production t_blk/BS/H switch to lax.fori_loop with
    # partial unroll + pl.ds offsets if the bundle dump shows vreg spills.
    for t in range(t_blk):
        gates = p[t * BS:(t + 1) * BS, :] + jnp.dot(
            h, whh_ref[...], preferred_element_type=jnp.float32)
        if H < 128:
            # 4H spans <= a few vregs of lanes: two full-tile nonlinearities
            # instead of four masked quarter-lane ones on the serial path.
            sig = jax.nn.sigmoid(gates)
            tah = jnp.tanh(gates)
            i_g = sig[:, 0 * H:1 * H]
            f_g = sig[:, 1 * H:2 * H]
            g_g = tah[:, 2 * H:3 * H]
            o_g = sig[:, 3 * H:4 * H]
        else:
            # At H >= 128 the gate slices are aligned full-vreg views.
            i_g = jax.nn.sigmoid(gates[:, 0 * H:1 * H])
            f_g = jax.nn.sigmoid(gates[:, 1 * H:2 * H])
            g_g = jnp.tanh(gates[:, 2 * H:3 * H])
            o_g = jax.nn.sigmoid(gates[:, 3 * H:4 * H])
        c = f_g * c + i_g * g_g
        h = o_g * jnp.tanh(c)
        h_blk[t * BS:(t + 1) * BS, :] = h     # VMEM scratch, not HBM
    h_s[...] = h
    c_s[...] = c

    # (3) Fused FC epilogue: one matmul over all of this block's hidden rows.
    y = jnp.dot(h_blk[...], wfc_ref[...],
                preferred_element_type=jnp.float32) + bfc_ref[...]
    y_ref[...] = y.reshape(t_blk, BS, O).astype(y_ref.dtype)


# ---------------------------------------------------------------------------
# Wrapper
# ---------------------------------------------------------------------------
def _pick_batch_shard(BP):
    """Shard size (multiple of 8) dividing BP; prefer >=2 shards when possible
    so v7x's two TensorCores can split the recurrence."""
    if BP >= 16:
        for bs in range(8 * (BP // 16), 0, -8):
            if BP % bs == 0:
                return bs
    return BP


def _vmem_limit_bytes(t_blk, BS, I, H, O):
    f4 = 4
    resident = (I * 4 * H + H * 4 * H + 4 * H + H * O + O) * f4
    streamed = 2 * (t_blk * BS * I + t_blk * BS * O) * f4   # double-buffered
    scratch = (2 * BS * H + t_blk * BS * H) * f4
    interm = 3 * t_blk * BS * 4 * H * f4                    # p / gate temps
    est = 2 * resident + streamed + scratch + interm
    # Generous slack for compiler temporaries; stay inside every chip's VMEM
    # (v7x has only 64 MiB physical per TensorCore).
    return int(min(48 * 1024 * 1024, max(4 * est, 16 * 1024 * 1024)))


def my_rnn_forward(x, w_ih, w_hh, b_ih, b_hh, w_fc, b_fc, *, t_blk=None):
    """Equivalent of MyRNN.forward.

    x:    (T, B, I) float32, time-major (batch_first=False)
    w_ih: (4H, I), w_hh: (4H, H), b_ih/b_hh: (4H,)  LSTM params (PyTorch layout)
    w_fc: (O, H), b_fc: (O,)                         Linear params (PyTorch layout)
    returns: (T*B, O)
    """
    T, B, I = x.shape
    H = w_ih.shape[0] // 4
    O = w_fc.shape[0]

    if t_blk is None:
        t_blk = T if T <= 8 else 8
    T_pad = pl.cdiv(T, t_blk) * t_blk        # padded steps trail the real ones
    BP = max(8, ((B + 7) // 8) * 8)          # pad batch to a sublane multiple
    BS = _pick_batch_shard(BP)
    n_shards = BP // BS

    x_p = x
    if (T_pad, BP) != (T, B):
        x_p = jnp.pad(x, ((0, T_pad - T), (0, BP - B), (0, 0)))

    wih_t = jnp.transpose(w_ih)              # (I, 4H)
    whh_t = jnp.transpose(w_hh)              # (H, 4H)
    bias = (b_ih + b_hh).reshape(1, 4 * H)   # (1, 4H)
    wfc_t = jnp.transpose(w_fc)              # (H, O)
    bfc = b_fc.reshape(1, O)                 # (1, O)

    y_pad = pl.pallas_call(
        fused_lstm_fc_kernel,
        out_shape=jax.ShapeDtypeStruct((T_pad, BP, O), jnp.float32),
        grid=(n_shards, T_pad // t_blk),
        in_specs=[
            pl.BlockSpec((t_blk, BS, I), lambda s, t: (t, s, 0)),
            pl.BlockSpec((I, 4 * H), lambda s, t: (0, 0)),
            pl.BlockSpec((H, 4 * H), lambda s, t: (0, 0)),
            pl.BlockSpec((1, 4 * H), lambda s, t: (0, 0)),
            pl.BlockSpec((H, O), lambda s, t: (0, 0)),
            pl.BlockSpec((1, O), lambda s, t: (0, 0)),
        ],
        out_specs=pl.BlockSpec((t_blk, BS, O), lambda s, t: (t, s, 0)),
        scratch_shapes=[
            pltpu.VMEM((BS, H), jnp.float32),           # h state
            pltpu.VMEM((BS, H), jnp.float32),           # c state
            pltpu.VMEM((t_blk * BS, H), jnp.float32),   # block hidden rows
        ],
        compiler_params=pltpu.CompilerParams(
            dimension_semantics=("parallel", "arbitrary"),
            vmem_limit_bytes=_vmem_limit_bytes(t_blk, BS, I, H, O)),
    )(x_p, wih_t, whh_t, bias, wfc_t, bfc)

    # Drop time/batch padding; O << H so this copy is cheap.
    return y_pad[:T, :B, :].reshape(T * B, O)


# ---------------------------------------------------------------------------
# Pure-JAX reference of the same forward pass (correctness check)
# ---------------------------------------------------------------------------
def reference_forward(x, w_ih, w_hh, b_ih, b_hh, w_fc, b_fc):
    T, B, I = x.shape
    H = w_ih.shape[0] // 4

    def step(carry, x_t):
        h, c = carry
        gates = x_t @ w_ih.T + h @ w_hh.T + b_ih + b_hh
        i_g = jax.nn.sigmoid(gates[:, 0 * H:1 * H])
        f_g = jax.nn.sigmoid(gates[:, 1 * H:2 * H])
        g_g = jnp.tanh(gates[:, 2 * H:3 * H])
        o_g = jax.nn.sigmoid(gates[:, 3 * H:4 * H])
        c = f_g * c + i_g * g_g
        h = o_g * jnp.tanh(c)
        return (h, c), h

    init = (jnp.zeros((B, H), jnp.float32), jnp.zeros((B, H), jnp.float32))
    _, hs = jax.lax.scan(step, init, x)          # (T, B, H)
    hs = hs.reshape(T * B, H)
    return hs @ w_fc.T + b_fc


if __name__ == "__main__":
    # Small shapes consistent with the module: seq=8, batch=2, input=16,
    # hidden=32, output=8.
    T, B, I, H, O = 8, 2, 16, 32, 8

    key = jax.random.PRNGKey(0)
    ks = jax.random.split(key, 7)
    k_lstm = 1.0 / jnp.sqrt(H)
    k_fc = 1.0 / jnp.sqrt(H)

    x = jax.random.normal(ks[0], (T, B, I), dtype=jnp.float32)
    w_ih = jax.random.uniform(ks[1], (4 * H, I), jnp.float32, -k_lstm, k_lstm)
    w_hh = jax.random.uniform(ks[2], (4 * H, H), jnp.float32, -k_lstm, k_lstm)
    b_ih = jax.random.uniform(ks[3], (4 * H,), jnp.float32, -k_lstm, k_lstm)
    b_hh = jax.random.uniform(ks[4], (4 * H,), jnp.float32, -k_lstm, k_lstm)
    w_fc = jax.random.uniform(ks[5], (O, H), jnp.float32, -k_fc, k_fc)
    b_fc = jax.random.uniform(ks[6], (O,), jnp.float32, -k_fc, k_fc)

    out = my_rnn_forward(x, w_ih, w_hh, b_ih, b_hh, w_fc, b_fc)
    out = jax.block_until_ready(out)

    ref = reference_forward(x, w_ih, w_hh, b_ih, b_hh, w_fc, b_fc)
    assert out.shape == (T * B, O), out.shape
    assert jnp.allclose(out, ref, atol=1e-5, rtol=1e-5), float(
        jnp.max(jnp.abs(out - ref)))

    print("KERNEL_OK")
</pallas_src>

<mosaic_0001>
module attributes {stable_mosaic.version = 11 : i64} {
  func.func @fused_lstm_fc_kernel(%arg0: i32, %arg1: i32, %arg2: memref<8x8x16xf32, #tpu.memory_space<vmem>>, %arg3: memref<16x128xf32, #tpu.memory_space<vmem>>, %arg4: memref<32x128xf32, #tpu.memory_space<vmem>>, %arg5: memref<1x128xf32, #tpu.memory_space<vmem>>, %arg6: memref<32x8xf32, #tpu.memory_space<vmem>>, %arg7: memref<1x8xf32, #tpu.memory_space<vmem>>, %arg8: memref<8x8x8xf32, #tpu.memory_space<vmem>>, %arg9: memref<8x32xf32, #tpu.memory_space<vmem>>, %arg10: memref<8x32xf32, #tpu.memory_space<vmem>>, %arg11: memref<64x32xf32, #tpu.memory_space<vmem>>) attributes {dimension_semantics = [#tpu.dimension_semantics<parallel>, #tpu.dimension_semantics<arbitrary>], iteration_bounds = array<i64: 1, 1>, scalar_prefetch = 0 : i64, scratch_operands = 3 : i64, tpu.core_type = #tpu.core_type<tc>, window_params = [{transform_indices = @transform_0, window_bounds = array<i64: 8, 8, 16>}, {pipeline_mode = #tpu.pipeline_mode<synchronous>, transform_indices = @transform_1, window_bounds = array<i64: 16, 128>}, {pipeline_mode = #tpu.pipeline_mode<synchronous>, transform_indices = @transform_2, window_bounds = array<i64: 32, 128>}, {pipeline_mode = #tpu.pipeline_mode<synchronous>, transform_indices = @transform_3, window_bounds = array<i64: 1, 128>}, {pipeline_mode = #tpu.pipeline_mode<synchronous>, transform_indices = @transform_4, window_bounds = array<i64: 32, 8>}, {pipeline_mode = #tpu.pipeline_mode<synchronous>, transform_indices = @transform_5, window_bounds = array<i64: 1, 8>}, {transform_indices = @transform_6, window_bounds = array<i64: 8, 8, 8>}]} {
    %c0_i32 = arith.constant 0 : i32
    %0 = arith.cmpi eq, %arg1, %c0_i32 : i32
    %1 = arith.extui %0 : i1 to i32
    %c0_i32_0 = arith.constant 0 : i32
    %2 = arith.cmpi ne, %1, %c0_i32_0 : i32
    scf.if %2 {
      %cst_66 = arith.constant 0.000000e+00 : f32
      %182 = vector.broadcast %cst_66 : f32 to vector<8x32xf32>
      %c0_67 = arith.constant 0 : index
      %c0_68 = arith.constant 0 : index
      %183 = vector.load %arg9[%c0_67, %c0_68] : memref<8x32xf32, #tpu.memory_space<vmem>>, vector<8x32xf32>
      tpu.vector_store %arg9[%c0_67, %c0_68], %182 {strides = array<i32>} : memref<8x32xf32, #tpu.memory_space<vmem>>, vector<8x32xf32>,
      %cst_69 = arith.constant 0.000000e+00 : f32
      %184 = vector.broadcast %cst_69 : f32 to vector<8x32xf32>
      %c0_70 = arith.constant 0 : index
      %c0_71 = arith.constant 0 : index
      %185 = vector.load %arg10[%c0_70, %c0_71] : memref<8x32xf32, #tpu.memory_space<vmem>>, vector<8x32xf32>
      tpu.vector_store %arg10[%c0_70, %c0_71], %184 {strides = array<i32>} : memref<8x32xf32, #tpu.memory_space<vmem>>, vector<8x32xf32>,
    } else {
    }
    %c0 = arith.constant 0 : index
    %c0_1 = arith.constant 0 : index
    %c0_2 = arith.constant 0 : index
    %3 = vector.load %arg2[%c0, %c0_1, %c0_2] : memref<8x8x16xf32, #tpu.memory_space<vmem>>, vector<8x8x16xf32>
    %4 = vector.shape_cast %3 : vector<8x8x16xf32> to vector<64x16xf32>
    %c0_3 = arith.constant 0 : index
    %c0_4 = arith.constant 0 : index
    %5 = vector.load %arg3[%c0_3, %c0_4] : memref<16x128xf32, #tpu.memory_space<vmem>>, vector<16x128xf32>
    %cst = arith.constant dense<0.000000e+00> : vector<64x128xf32>
    %6 = tpu.matmul %4, %5, %cst {dimension_numbers = #tpu.dot_dimension_numbers<[1], [0], [0], [1], [0, 0, 1, 1], [], []>} : vector<64x16xf32>, vector<16x128xf32>, vector<64x128xf32> -> vector<64x128xf32>
    %c0_5 = arith.constant 0 : index
    %c0_6 = arith.constant 0 : index
    %7 = vector.load %arg5[%c0_5, %c0_6] : memref<1x128xf32, #tpu.memory_space<vmem>>, vector<1x128xf32>
    %8 = vector.broadcast %7 : vector<1x128xf32> to vector<64x128xf32>
    %9 = arith.addf %6, %8 : vector<64x128xf32>
    %c0_7 = arith.constant 0 : index
    %c0_8 = arith.constant 0 : index
    %10 = vector.load %arg9[%c0_7, %c0_8] : memref<8x32xf32, #tpu.memory_space<vmem>>, vector<8x32xf32>
    %c0_9 = arith.constant 0 : index
    %c0_10 = arith.constant 0 : index
    %11 = vector.load %arg10[%c0_9, %c0_10] : memref<8x32xf32, #tpu.memory_space<vmem>>, vector<8x32xf32>
    %12 = vector.extract_strided_slice %9 {offsets = [0, 0], sizes = [8, 128], strides = [1, 1]} : vector<64x128xf32> to vector<8x128xf32>
    %c0_11 = arith.constant 0 : index
    %c0_12 = arith.constant 0 : index
    %13 = vector.load %arg4[%c0_11, %c0_12] : memref<32x128xf32, #tpu.memory_space<vmem>>, vector<32x128xf32>
    %cst_13 = arith.constant dense<0.000000e+00> : vector<8x128xf32>
    %14 = tpu.matmul %10, %13, %cst_13 {dimension_numbers = #tpu.dot_dimension_numbers<[1], [0], [0], [1], [0, 0, 1, 1], [], []>} : vector<8x32xf32>, vector<32x128xf32>, vector<8x128xf32> -> vector<8x128xf32>
    %15 = arith.addf %12, %14 : vector<8x128xf32>
    %16 = arith.negf %15 : vector<8x128xf32>
    %17 = math.exp %16 : vector<8x128xf32>
    %cst_14 = arith.constant 1.000000e+00 : f32
    %18 = vector.broadcast %cst_14 : f32 to vector<8x128xf32>
    %19 = arith.addf %18, %17 : vector<8x128xf32>
    %20 = arith.divf %18, %19 : vector<8x128xf32>
    %21 = math.tanh %15 : vector<8x128xf32>
    %22 = vector.extract_strided_slice %20 {offsets = [0, 0], sizes = [8, 32], strides = [1, 1]} : vector<8x128xf32> to vector<8x32xf32>
    %23 = vector.extract_strided_slice %20 {offsets = [0, 32], sizes = [8, 32], strides = [1, 1]} : vector<8x128xf32> to vector<8x32xf32>
    %24 = vector.extract_strided_slice %21 {offsets = [0, 64], sizes = [8, 32], strides = [1, 1]} : vector<8x128xf32> to vector<8x32xf32>
    %25 = vector.extract_strided_slice %20 {offsets = [0, 96], sizes = [8, 32], strides = [1, 1]} : vector<8x128xf32> to vector<8x32xf32>
    %26 = arith.mulf %23, %11 : vector<8x32xf32>
    %27 = arith.mulf %22, %24 : vector<8x32xf32>
    %28 = arith.addf %26, %27 : vector<8x32xf32>
    %29 = math.tanh %28 : vector<8x32xf32>
    %30 = arith.mulf %25, %29 : vector<8x32xf32>
    %c0_15 = arith.constant 0 : index
    %c0_16 = arith.constant 0 : index
    %31 = vector.load %arg11[%c0_15, %c0_16] : memref<64x32xf32, #tpu.memory_space<vmem>>, vector<8x32xf32>
    tpu.vector_store %arg11[%c0_15, %c0_16], %30 {strides = array<i32>} : memref<64x32xf32, #tpu.memory_space<vmem>>, vector<8x32xf32>,
    %32 = vector.extract_strided_slice %9 {offsets = [8, 0], sizes = [8, 128], strides = [1, 1]} : vector<64x128xf32> to vector<8x128xf32>
    %c0_17 = arith.constant 0 : index
    %c0_18 = arith.constant 0 : index
    %33 = vector.load %arg4[%c0_17, %c0_18] : memref<32x128xf32, #tpu.memory_space<vmem>>, vector<32x128xf32>
    %cst_19 = arith.constant dense<0.000000e+00> : vector<8x128xf32>
    %34 = tpu.matmul %30, %33, %cst_19 {dimension_numbers = #tpu.dot_dimension_numbers<[1], [0], [0], [1], [0, 0, 1, 1], [], []>} : vector<8x32xf32>, vector<32x128xf32>, vector<8x128xf32> -> vector<8x128xf32>
    %35 = arith.addf %32, %34 : vector<8x128xf32>
    %36 = arith.negf %35 : vector<8x128xf32>
    %37 = math.exp %36 : vector<8x128xf32>
    %cst_20 = arith.constant 1.000000e+00 : f32
    %38 = vector.broadcast %cst_20 : f32 to vector<8x128xf32>
    %39 = arith.addf %38, %37 : vector<8x128xf32>
    %40 = arith.divf %38, %39 : vector<8x128xf32>
    %41 = math.tanh %35 : vector<8x128xf32>
    %42 = vector.extract_strided_slice %40 {offsets = [0, 0], sizes = [8, 32], strides = [1, 1]} : vector<8x128xf32> to vector<8x32xf32>
    %43 = vector.extract_strided_slice %40 {offsets = [0, 32], sizes = [8, 32], strides = [1, 1]} : vector<8x128xf32> to vector<8x32xf32>
    %44 = vector.extract_strided_slice %41 {offsets = [0, 64], sizes = [8, 32], strides = [1, 1]} : vector<8x128xf32> to vector<8x32xf32>
    %45 = vector.extract_strided_slice %40 {offsets = [0, 96], sizes = [8, 32], strides = [1, 1]} : vector<8x128xf32> to vector<8x32xf32>
    %46 = arith.mulf %43, %28 : vector<8x32xf32>
    %47 = arith.mulf %42, %44 : vector<8x32xf32>
    %48 = arith.addf %46, %47 : vector<8x32xf32>
    %49 = math.tanh %48 : vector<8x32xf32>
    %50 = arith.mulf %45, %49 : vector<8x32xf32>
    %c8 = arith.constant 8 : index
    %c0_21 = arith.constant 0 : index
    %51 = vector.load %arg11[%c8, %c0_21] : memref<64x32xf32, #tpu.memory_space<vmem>>, vector<8x32xf32>
    tpu.vector_store %arg11[%c8, %c0_21], %50 {strides = array<i32>} : memref<64x32xf32, #tpu.memory_space<vmem>>, vector<8x32xf32>,
    %52 = vector.extract_strided_slice %9 {offsets = [16, 0], sizes = [8, 128], strides = [1, 1]} : vector<64x128xf32> to vector<8x128xf32>
    %c0_22 = arith.constant 0 : index
    %c0_23 = arith.constant 0 : index
    %53 = vector.load %arg4[%c0_22, %c0_23] : memref<32x128xf32, #tpu.memory_space<vmem>>, vector<32x128xf32>
    %cst_24 = arith.constant dense<0.000000e+00> : vector<8x128xf32>
    %54 = tpu.matmul %50, %53, %cst_24 {dimension_numbers = #tpu.dot_dimension_numbers<[1], [0], [0], [1], [0, 0, 1, 1], [], []>} : vector<8x32xf32>, vector<32x128xf32>, vector<8x128xf32> -> vector<8x128xf32>
    %55 = arith.addf %52, %54 : vector<8x128xf32>
    %56 = arith.negf %55 : vector<8x128xf32>
    %57 = math.exp %56 : vector<8x128xf32>
    %cst_25 = arith.constant 1.000000e+00 : f32
    %58 = vector.broadcast %cst_25 : f32 to vector<8x128xf32>
    %59 = arith.addf %58, %57 : vector<8x128xf32>
    %60 = arith.divf %58, %59 : vector<8x128xf32>
    %61 = math.tanh %55 : vector<8x128xf32>
    %62 = vector.extract_strided_slice %60 {offsets = [0, 0], sizes = [8, 32], strides = [1, 1]} : vector<8x128xf32> to vector<8x32xf32>
    %63 = vector.extract_strided_slice %60 {offsets = [0, 32], sizes = [8, 32], strides = [1, 1]} : vector<8x128xf32> to vector<8x32xf32>
    %64 = vector.extract_strided_slice %61 {offsets = [0, 64], sizes = [8, 32], strides = [1, 1]} : vector<8x128xf32> to vector<8x32xf32>
    %65 = vector.extract_strided_slice %60 {offsets = [0, 96], sizes = [8, 32], strides = [1, 1]} : vector<8x128xf32> to vector<8x32xf32>
    %66 = arith.mulf %63, %48 : vector<8x32xf32>
    %67 = arith.mulf %62, %64 : vector<8x32xf32>
    %68 = arith.addf %66, %67 : vector<8x32xf32>
    %69 = math.tanh %68 : vector<8x32xf32>
    %70 = arith.mulf %65, %69 : vector<8x32xf32>
    %c16 = arith.constant 16 : index
    %c0_26 = arith.constant 0 : index
    %71 = vector.load %arg11[%c16, %c0_26] : memref<64x32xf32, #tpu.memory_space<vmem>>, vector<8x32xf32>
    tpu.vector_store %arg11[%c16, %c0_26], %70 {strides = array<i32>} : memref<64x32xf32, #tpu.memory_space<vmem>>, vector<8x32xf32>,
    %72 = vector.extract_strided_slice %9 {offsets = [24, 0], sizes = [8, 128], strides = [1, 1]} : vector<64x128xf32> to vector<8x128xf32>
    %c0_27 = arith.constant 0 : index
    %c0_28 = arith.constant 0 : index
    %73 = vector.load %arg4[%c0_27, %c0_28] : memref<32x128xf32, #tpu.memory_space<vmem>>, vector<32x128xf32>
    %cst_29 = arith.constant dense<0.000000e+00> : vector<8x128xf32>
    %74 = tpu.matmul %70, %73, %cst_29 {dimension_numbers = #tpu.dot_dimension_numbers<[1], [0], [0], [1], [0, 0, 1, 1], [], []>} : vector<8x32xf32>, vector<32x128xf32>, vector<8x128xf32> -> vector<8x128xf32>
    %75 = arith.addf %72, %74 : vector<8x128xf32>
    %76 = arith.negf %75 : vector<8x128xf32>
    %77 = math.exp %76 : vector<8x128xf32>
    %cst_30 = arith.constant 1.000000e+00 : f32
    %78 = vector.broadcast %cst_30 : f32 to vector<8x128xf32>
    %79 = arith.addf %78, %77 : vector<8x128xf32>
    %80 = arith.divf %78, %79 : vector<8x128xf32>
    %81 = math.tanh %75 : vector<8x128xf32>
    %82 = vector.extract_strided_slice %80 {offsets = [0, 0], sizes = [8, 32], strides = [1, 1]} : vector<8x128xf32> to vector<8x32xf32>
    %83 = vector.extract_strided_slice %80 {offsets = [0, 32], sizes = [8, 32], strides = [1, 1]} : vector<8x128xf32> to vector<8x32xf32>
    %84 = vector.extract_strided_slice %81 {offsets = [0, 64], sizes = [8, 32], strides = [1, 1]} : vector<8x128xf32> to vector<8x32xf32>
    %85 = vector.extract_strided_slice %80 {offsets = [0, 96], sizes = [8, 32], strides = [1, 1]} : vector<8x128xf32> to vector<8x32xf32>
    %86 = arith.mulf %83, %68 : vector<8x32xf32>
    %87 = arith.mulf %82, %84 : vector<8x32xf32>
    %88 = arith.addf %86, %87 : vector<8x32xf32>
    %89 = math.tanh %88 : vector<8x32xf32>
    %90 = arith.mulf %85, %89 : vector<8x32xf32>
    %c24 = arith.constant 24 : index
    %c0_31 = arith.constant 0 : index
    %91 = vector.load %arg11[%c24, %c0_31] : memref<64x32xf32, #tpu.memory_space<vmem>>, vector<8x32xf32>
    tpu.vector_store %arg11[%c24, %c0_31], %90 {strides = array<i32>} : memref<64x32xf32, #tpu.memory_space<vmem>>, vector<8x32xf32>,
    %92 = vector.extract_strided_slice %9 {offsets = [32, 0], sizes = [8, 128], strides = [1, 1]} : vector<64x128xf32> to vector<8x128xf32>
    %c0_32 = arith.constant 0 : index
    %c0_33 = arith.constant 0 : index
    %93 = vector.load %arg4[%c0_32, %c0_33] : memref<32x128xf32, #tpu.memory_space<vmem>>, vector<32x128xf32>
    %cst_34 = arith.constant dense<0.000000e+00> : vector<8x128xf32>
    %94 = tpu.matmul %90, %93, %cst_34 {dimension_numbers = #tpu.dot_dimension_numbers<[1], [0], [0], [1], [0, 0, 1, 1], [], []>} : vector<8x32xf32>, vector<32x128xf32>, vector<8x128xf32> -> vector<8x128xf32>
    %95 = arith.addf %92, %94 : vector<8x128xf32>
    %96 = arith.negf %95 : vector<8x128xf32>
    %97 = math.exp %96 : vector<8x128xf32>
    %cst_35 = arith.constant 1.000000e+00 : f32
    %98 = vector.broadcast %cst_35 : f32 to vector<8x128xf32>
    %99 = arith.addf %98, %97 : vector<8x128xf32>
    %100 = arith.divf %98, %99 : vector<8x128xf32>
    %101 = math.tanh %95 : vector<8x128xf32>
    %102 = vector.extract_strided_slice %100 {offsets = [0, 0], sizes = [8, 32], strides = [1, 1]} : vector<8x128xf32> to vector<8x32xf32>
    %103 = vector.extract_strided_slice %100 {offsets = [0, 32], sizes = [8, 32], strides = [1, 1]} : vector<8x128xf32> to vector<8x32xf32>
    %104 = vector.extract_strided_slice %101 {offsets = [0, 64], sizes = [8, 32], strides = [1, 1]} : vector<8x128xf32> to vector<8x32xf32>
    %105 = vector.extract_strided_slice %100 {offsets = [0, 96], sizes = [8, 32], strides = [1, 1]} : vector<8x128xf32> to vector<8x32xf32>
    %106 = arith.mulf %103, %88 : vector<8x32xf32>
    %107 = arith.mulf %102, %104 : vector<8x32xf32>
    %108 = arith.addf %106, %107 : vector<8x32xf32>
    %109 = math.tanh %108 : vector<8x32xf32>
    %110 = arith.mulf %105, %109 : vector<8x32xf32>
    %c32 = arith.constant 32 : index
    %c0_36 = arith.constant 0 : index
    %111 = vector.load %arg11[%c32, %c0_36] : memref<64x32xf32, #tpu.memory_space<vmem>>, vector<8x32xf32>
    tpu.vector_store %arg11[%c32, %c0_36], %110 {strides = array<i32>} : memref<64x32xf32, #tpu.memory_space<vmem>>, vector<8x32xf32>,
    %112 = vector.extract_strided_slice %9 {offsets = [40, 0], sizes = [8, 128], strides = [1, 1]} : vector<64x128xf32> to vector<8x128xf32>
    %c0_37 = arith.constant 0 : index
    %c0_38 = arith.constant 0 : index
    %113 = vector.load %arg4[%c0_37, %c0_38] : memref<32x128xf32, #tpu.memory_space<vmem>>, vector<32x128xf32>
    %cst_39 = arith.constant dense<0.000000e+00> : vector<8x128xf32>
    %114 = tpu.matmul %110, %113, %cst_39 {dimension_numbers = #tpu.dot_dimension_numbers<[1], [0], [0], [1], [0, 0, 1, 1], [], []>} : vector<8x32xf32>, vector<32x128xf32>, vector<8x128xf32> -> vector<8x128xf32>
    %115 = arith.addf %112, %114 : vector<8x128xf32>
    %116 = arith.negf %115 : vector<8x128xf32>
    %117 = math.exp %116 : vector<8x128xf32>
    %cst_40 = arith.constant 1.000000e+00 : f32
    %118 = vector.broadcast %cst_40 : f32 to vector<8x128xf32>
    %119 = arith.addf %118, %117 : vector<8x128xf32>
    %120 = arith.divf %118, %119 : vector<8x128xf32>
    %121 = math.tanh %115 : vector<8x128xf32>
    %122 = vector.extract_strided_slice %120 {offsets = [0, 0], sizes = [8, 32], strides = [1, 1]} : vector<8x128xf32> to vector<8x32xf32>
    %123 = vector.extract_strided_slice %120 {offsets = [0, 32], sizes = [8, 32], strides = [1, 1]} : vector<8x128xf32> to vector<8x32xf32>
    %124 = vector.extract_strided_slice %121 {offsets = [0, 64], sizes = [8, 32], strides = [1, 1]} : vector<8x128xf32> to vector<8x32xf32>
    %125 = vector.extract_strided_slice %120 {offsets = [0, 96], sizes = [8, 32], strides = [1, 1]} : vector<8x128xf32> to vector<8x32xf32>
    %126 = arith.mulf %123, %108 : vector<8x32xf32>
    %127 = arith.mulf %122, %124 : vector<8x32xf32>
    %128 = arith.addf %126, %127 : vector<8x32xf32>
    %129 = math.tanh %128 : vector<8x32xf32>
    %130 = arith.mulf %125, %129 : vector<8x32xf32>
    %c40 = arith.constant 40 : index
    %c0_41 = arith.constant 0 : index
    %131 = vector.load %arg11[%c40, %c0_41] : memref<64x32xf32, #tpu.memory_space<vmem>>, vector<8x32xf32>
    tpu.vector_store %arg11[%c40, %c0_41], %130 {strides = array<i32>} : memref<64x32xf32, #tpu.memory_space<vmem>>, vector<8x32xf32>,
    %132 = vector.extract_strided_slice %9 {offsets = [48, 0], sizes = [8, 128], strides = [1, 1]} : vector<64x128xf32> to vector<8x128xf32>
    %c0_42 = arith.constant 0 : index
    %c0_43 = arith.constant 0 : index
    %133 = vector.load %arg4[%c0_42, %c0_43] : memref<32x128xf32, #tpu.memory_space<vmem>>, vector<32x128xf32>
    %cst_44 = arith.constant dense<0.000000e+00> : vector<8x128xf32>
    %134 = tpu.matmul %130, %133, %cst_44 {dimension_numbers = #tpu.dot_dimension_numbers<[1], [0], [0], [1], [0, 0, 1, 1], [], []>} : vector<8x32xf32>, vector<32x128xf32>, vector<8x128xf32> -> vector<8x128xf32>
    %135 = arith.addf %132, %134 : vector<8x128xf32>
    %136 = arith.negf %135 : vector<8x128xf32>
    %137 = math.exp %136 : vector<8x128xf32>
    %cst_45 = arith.constant 1.000000e+00 : f32
    %138 = vector.broadcast %cst_45 : f32 to vector<8x128xf32>
    %139 = arith.addf %138, %137 : vector<8x128xf32>
    %140 = arith.divf %138, %139 : vector<8x128xf32>
    %141 = math.tanh %135 : vector<8x128xf32>
    %142 = vector.extract_strided_slice %140 {offsets = [0, 0], sizes = [8, 32], strides = [1, 1]} : vector<8x128xf32> to vector<8x32xf32>
    %143 = vector.extract_strided_slice %140 {offsets = [0, 32], sizes = [8, 32], strides = [1, 1]} : vector<8x128xf32> to vector<8x32xf32>
    %144 = vector.extract_strided_slice %141 {offsets = [0, 64], sizes = [8, 32], strides = [1, 1]} : vector<8x128xf32> to vector<8x32xf32>
    %145 = vector.extract_strided_slice %140 {offsets = [0, 96], sizes = [8, 32], strides = [1, 1]} : vector<8x128xf32> to vector<8x32xf32>
    %146 = arith.mulf %143, %128 : vector<8x32xf32>
    %147 = arith.mulf %142, %144 : vector<8x32xf32>
    %148 = arith.addf %146, %147 : vector<8x32xf32>
    %149 = math.tanh %148 : vector<8x32xf32>
    %150 = arith.mulf %145, %149 : vector<8x32xf32>
    %c48 = arith.constant 48 : index
    %c0_46 = arith.constant 0 : index
    %151 = vector.load %arg11[%c48, %c0_46] : memref<64x32xf32, #tpu.memory_space<vmem>>, vector<8x32xf32>
    tpu.vector_store %arg11[%c48, %c0_46], %150 {strides = array<i32>} : memref<64x32xf32, #tpu.memory_space<vmem>>, vector<8x32xf32>,
    %152 = vector.extract_strided_slice %9 {offsets = [56, 0], sizes = [8, 128], strides = [1, 1]} : vector<64x128xf32> to vector<8x128xf32>
    %c0_47 = arith.constant 0 : index
    %c0_48 = arith.constant 0 : index
    %153 = vector.load %arg4[%c0_47, %c0_48] : memref<32x128xf32, #tpu.memory_space<vmem>>, vector<32x128xf32>
    %cst_49 = arith.constant dense<0.000000e+00> : vector<8x128xf32>
    %154 = tpu.matmul %150, %153, %cst_49 {dimension_numbers = #tpu.dot_dimension_numbers<[1], [0], [0], [1], [0, 0, 1, 1], [], []>} : vector<8x32xf32>, vector<32x128xf32>, vector<8x128xf32> -> vector<8x128xf32>
    %155 = arith.addf %152, %154 : vector<8x128xf32>
    %156 = arith.negf %155 : vector<8x128xf32>
    %157 = math.exp %156 : vector<8x128xf32>
    %cst_50 = arith.constant 1.000000e+00 : f32
    %158 = vector.broadcast %cst_50 : f32 to vector<8x128xf32>
    %159 = arith.addf %158, %157 : vector<8x128xf32>
    %160 = arith.divf %158, %159 : vector<8x128xf32>
    %161 = math.tanh %155 : vector<8x128xf32>
    %162 = vector.extract_strided_slice %160 {offsets = [0, 0], sizes = [8, 32], strides = [1, 1]} : vector<8x128xf32> to vector<8x32xf32>
    %163 = vector.extract_strided_slice %160 {offsets = [0, 32], sizes = [8, 32], strides = [1, 1]} : vector<8x128xf32> to vector<8x32xf32>
    %164 = vector.extract_strided_slice %161 {offsets = [0, 64], sizes = [8, 32], strides = [1, 1]} : vector<8x128xf32> to vector<8x32xf32>
    %165 = vector.extract_strided_slice %160 {offsets = [0, 96], sizes = [8, 32], strides = [1, 1]} : vector<8x128xf32> to vector<8x32xf32>
    %166 = arith.mulf %163, %148 : vector<8x32xf32>
    %167 = arith.mulf %162, %164 : vector<8x32xf32>
    %168 = arith.addf %166, %167 : vector<8x32xf32>
    %169 = math.tanh %168 : vector<8x32xf32>
    %170 = arith.mulf %165, %169 : vector<8x32xf32>
    %c56 = arith.constant 56 : index
    %c0_51 = arith.constant 0 : index
    %171 = vector.load %arg11[%c56, %c0_51] : memref<64x32xf32, #tpu.memory_space<vmem>>, vector<8x32xf32>
    tpu.vector_store %arg11[%c56, %c0_51], %170 {strides = array<i32>} : memref<64x32xf32, #tpu.memory_space<vmem>>, vector<8x32xf32>,
    %c0_52 = arith.constant 0 : index
    %c0_53 = arith.constant 0 : index
    %172 = vector.load %arg9[%c0_52, %c0_53] : memref<8x32xf32, #tpu.memory_space<vmem>>, vector<8x32xf32>
    tpu.vector_store %arg9[%c0_52, %c0_53], %170 {strides = array<i32>} : memref<8x32xf32, #tpu.memory_space<vmem>>, vector<8x32xf32>,
    %c0_54 = arith.constant 0 : index
    %c0_55 = arith.constant 0 : index
    %173 = vector.load %arg10[%c0_54, %c0_55] : memref<8x32xf32, #tpu.memory_space<vmem>>, vector<8x32xf32>
    tpu.vector_store %arg10[%c0_54, %c0_55], %168 {strides = array<i32>} : memref<8x32xf32, #tpu.memory_space<vmem>>, vector<8x32xf32>,
    %c0_56 = arith.constant 0 : index
    %c0_57 = arith.constant 0 : index
    %174 = vector.load %arg11[%c0_56, %c0_57] : memref<64x32xf32, #tpu.memory_space<vmem>>, vector<64x32xf32>
    %c0_58 = arith.constant 0 : index
    %c0_59 = arith.constant 0 : index
    %175 = vector.load %arg6[%c0_58, %c0_59] : memref<32x8xf32, #tpu.memory_space<vmem>>, vector<32x8xf32>
    %cst_60 = arith.constant dense<0.000000e+00> : vector<64x8xf32>
    %176 = tpu.matmul %174, %175, %cst_60 {dimension_numbers = #tpu.dot_dimension_numbers<[1], [0], [0], [1], [0, 0, 1, 1], [], []>} : vector<64x32xf32>, vector<32x8xf32>, vector<64x8xf32> -> vector<64x8xf32>
    %c0_61 = arith.constant 0 : index
    %c0_62 = arith.constant 0 : index
    %177 = vector.load %arg7[%c0_61, %c0_62] : memref<1x8xf32, #tpu.memory_space<vmem>>, vector<1x8xf32>
    %178 = vector.broadcast %177 : vector<1x8xf32> to vector<64x8xf32>
    %179 = arith.addf %176, %178 : vector<64x8xf32>
    %180 = vector.shape_cast %179 : vector<64x8xf32> to vector<8x8x8xf32>
    %c0_63 = arith.constant 0 : index
    %c0_64 = arith.constant 0 : index
    %c0_65 = arith.constant 0 : index
    %181 = vector.load %arg8[%c0_63, %c0_64, %c0_65] : memref<8x8x8xf32, #tpu.memory_space<vmem>>, vector<8x8x8xf32>
    tpu.vector_store %arg8[%c0_63, %c0_64, %c0_65], %180 {strides = array<i32>} : memref<8x8x8xf32, #tpu.memory_space<vmem>>, vector<8x8x8xf32>,
    return
  }
  func.func @transform_0(%arg0: i32, %arg1: i32) -> (i32, i32, i32) {
    %c0_i32 = arith.constant 0 : i32
    %c0_i32_0 = arith.constant 0 : i32
    return %arg1, %arg0, %c0_i32 : i32, i32, i32
  }
  func.func @transform_1(%arg0: i32, %arg1: i32) -> (i32, i32) {
    %c0_i32 = arith.constant 0 : i32
    %c0_i32_0 = arith.constant 0 : i32
    %c0_i32_1 = arith.constant 0 : i32
    return %c0_i32, %c0_i32_0 : i32, i32
  }
  func.func @transform_2(%arg0: i32, %arg1: i32) -> (i32, i32) {
    %c0_i32 = arith.constant 0 : i32
    %c0_i32_0 = arith.constant 0 : i32
    %c0_i32_1 = arith.constant 0 : i32
    return %c0_i32, %c0_i32_0 : i32, i32
  }
  func.func @transform_3(%arg0: i32, %arg1: i32) -> (i32, i32) {
    %c0_i32 = arith.constant 0 : i32
    %c0_i32_0 = arith.constant 0 : i32
    %c0_i32_1 = arith.constant 0 : i32
    return %c0_i32, %c0_i32_0 : i32, i32
  }
  func.func @transform_4(%arg0: i32, %arg1: i32) -> (i32, i32) {
    %c0_i32 = arith.constant 0 : i32
    %c0_i32_0 = arith.constant 0 : i32
    %c0_i32_1 = arith.constant 0 : i32
    return %c0_i32, %c0_i32_0 : i32, i32
  }
  func.func @transform_5(%arg0: i32, %arg1: i32) -> (i32, i32) {
    %c0_i32 = arith.constant 0 : i32
    %c0_i32_0 = arith.constant 0 : i32
    %c0_i32_1 = arith.constant 0 : i32
    return %c0_i32, %c0_i32_0 : i32, i32
  }
  func.func @transform_6(%arg0: i32, %arg1: i32) -> (i32, i32, i32) {
    %c0_i32 = arith.constant 0 : i32
    %c0_i32_0 = arith.constant 0 : i32
    return %arg1, %arg0, %c0_i32 : i32, i32, i32
  }
}

</mosaic_0001>

<bundles_post_ra>
// kernel: tpu_custom_call.1
= control target key start
LH: loop header
LB: loop body
LE: loop exit
PB: predicated region body
PF: predicated region fallthrough
CT: control target
= control target key end

     0   :  { %11 = vsyncpa [#allocation6], 0  ;;  %s1960_s0 = inlined_call_operand.hbm [shape: f32[8,8,16], index: 0, kind: input, shape index: {}]   ;;  %s1961_s1 = inlined_call_operand.hbm [shape: f32[16,128], index: 1, kind: input, shape index: {}]   ;;  %s1962_s2 = inlined_call_operand.vmem [shape: f32[32,128], index: 2, kind: input, shape index: {}]   ;;  %s1963_s3 = inlined_call_operand.vmem [shape: f32[1,128], index: 3, kind: input, shape index: {}]   ;;  %s1964_s4 = inlined_call_operand.vmem [shape: f32[32,8], index: 4, kind: input, shape index: {}]   ;;  %s1965_s5 = inlined_call_operand.vmem [shape: f32[1,8], index: 5, kind: input, shape index: {}]   ;;  %s1966_s6 = inlined_call_operand.hbm [shape: f32[8,8,8], index: 6, kind: output, shape index: {}]  }
   0x1   :  { %12 = vsyncpa [#allocation9], 0 }
   0x2   :  { %13 = vsyncpa [#allocation7], 0  ;;  %s1672_s21 = smov [#allocation5]   ;;  %s1600_s25 = scalar_lea.hbm %s1960_s0, 1024 }
   0x3   :  { %s19_s22 = sshll.u32 %s1672_s21, 4  ;;  %p1601_p0 = scmp.ne.s32.totalorder %s1960_s0, %s1600_s25  ;;  %s20_s22 = int_to_ptr.vmem [resolvable:$true] %s19_s22 }
   0x4   :  { %p1604_p1 = scmp.lt.u32.totalorder %s1600_s25, %s1960_s0 }
   0x6   :  { %p1606_p2 = pnand %p1604_p1, %p1601_p0 }
   0x8   :  { %1609 = shalt.err (!%p1606_p2)
}
   0x9   :  { %s1610_s30 = scalar_lea.vmem %s20_s22, 1024  ;;  %p1615_p4 = scmp.lt.s32.totalorder %s20_s22, %s20_s22 }
   0xa   :  { %p1611_p3 = scmp.ne.s32.totalorder %s20_s22, %s1610_s30  ;;  %p1616_p5 = scmp.lt.s32.totalorder %s1610_s30, %s1610_s30 }
   0xc   :  { %p1617_p6 = por %p1616_p5, %p1615_p4 }
   0xe   :  { %p1618_p7 = pnand %p1617_p6, %p1611_p3 }
  0x10   :  { %1621 = shalt.err (!%p1618_p7)
}
  0x11   :  { %s1673_s7 = smov 128   ;;  %s1674_s8 = smov 8  }
  0x12   :  { %25 = dma.hbm_to_vmem [thread:$0]  %s1960_s0, 1024, %s20_s22, [#allocation6], %s1673_s7, %s1673_s7, %s1674_s8  }
  0x13   :  { %s1675_s11 = smov [#allocation8]   ;;  %s1622_s15 = scalar_lea.hbm %s1961_s1, 256 }
  0x14   :  { %s31_s12 = sshll.u32 %s1675_s11, 4  ;;  %p1623_p8 = scmp.ne.s32.totalorder %s1961_s1, %s1622_s15  ;;  %s32_s12 = int_to_ptr.vmem [resolvable:$true] %s31_s12 }
  0x15   :  { %p1626_p9 = scmp.lt.u32.totalorder %s1622_s15, %s1961_s1 }
  0x17   :  { %p1628_p10 = pnand %p1626_p9, %p1623_p8 }
  0x19   :  { %1631 = shalt.err (!%p1628_p10)
}
  0x1a   :  { %s1632_s20 = scalar_lea.vmem %s32_s12, 256  ;;  %p1637_p12 = scmp.lt.s32.totalorder %s32_s12, %s32_s12 }
  0x1b   :  { %p1633_p11 = scmp.ne.s32.totalorder %s32_s12, %s1632_s20  ;;  %p1638_p13 = scmp.lt.s32.totalorder %s1632_s20, %s1632_s20 }
  0x1d   :  { %p1639_p0 = por %p1638_p13, %p1637_p12 }
  0x1f   :  { %p1640_p1 = pnand %p1639_p0, %p1633_p11 }
  0x21   :  { %1643 = shalt.err (!%p1640_p1)
}
  0x22   :  { %37 = dma.hbm_to_vmem [thread:$0]  %s1961_s1, 256, %s32_s12, [#allocation9], %s1673_s7, %s1673_s7, %s1674_s8  }
  0x23   :  { %1666 = dma.done.wait [#allocation6], 1024  }
  0x24   :  { %1667 = vsyncadd [#allocation6], 4294966272 }
  0x25   :  { %1668 = dma.done.wait [#allocation9], 256  }
  0x26   :  { %1669 = vsyncadd [#allocation9], 4294967040  ;;  %vm56_vm0 = vcmask 261120   ;;  %v1676_v0 = vmov 0.0   ;;  %vm76_vm1 = vcmask 130048   ;;  %v67_v1 = vld [vmem:[#allocation8] sm:$0xff] }
  0x27   :  { %57 = vst.msk [vmem:[#allocation2] sm:$0xff] %vm56_vm0, %v1676_v0  ;;  %58 = vst.msk [vmem:[#allocation3] sm:$0xff] %vm56_vm0, %v1676_v0  ;;  %v68_v2 = vld [vmem:[#allocation8 + $0x8] sm:$0xff]  ;;  %v63_v3 = vld [vmem:[#allocation5 + $0x20] sm:$0xff]  ;;  %v1677_v11 = vmov 0.0|0.0   ;;  %vm1678_vm2 = vmmov 0  }
  0x28   :  { %v1463_v4 = vpack.c.bf16 %v68_v2, %v67_v1  ;;  %1349 = vmatprep.mubr.msk.f32.mxu1 %vm76_vm1, %v63_v3  ;;  %v208_v5 = vld [vmem:[%s1962_s2] sm:$0xff]  ;;  %v209_v6 = vld [vmem:[%s1962_s2 + $0x8] sm:$0xff]  ;;  %v59_v7 = vld [vmem:[#allocation5] sm:$0xff]  ;;  %s1679_s30 = smov 64   ;;  %s1680_s9 = smov 32   ;;  %vm1216_vm3 = vcmask 64512  }
  0x29   :  { %v64_v8 = vld [vmem:[#allocation5 + $0x28] sm:$0xff]  ;;  %v1759_v9 = vpack.c.bf16 %v209_v6, %v208_v5  ;;  %v65_v12 = vld [vmem:[#allocation5 + $0x30] sm:$0xff]  ;;  %1343 = vmatprep.mubr.msk.f32.mxu0 %vm76_vm1, %v59_v7  ;;  %v210_v13 = vld [vmem:[%s1962_s2 + $0x10] sm:$0xff]  ;;  %s1682_s18 = smov [#allocation10]  }
  0x2a   :  { %1523 = vmatprep.subr.bf16.mxu1 %v1463_v4  ;;  %1464 = vmatprep.subr.bf16.mxu0 %v1463_v4  ;;  %v60_v10 = vld [vmem:[#allocation5 + $0x8] sm:$0xff]  ;;  %v66_v15 = vld [vmem:[#allocation5 + $0x38] sm:$0xff]  ;;  %v1800_v22 = vld [vmem:[%s1963_s3] ss:$0 sm:$0xff]  ;;  %s1230_s19 = sshll.u32 %s1682_s18, 4  ;;  %s1231_s19 = int_to_ptr.vmem [resolvable:$true] %s1230_s19 }
  0x2b   :  { %1524 = vmatpush3.bf16.msra.mxu1 %v1463_v4  ;;  %1466 = vmatpush3.bf16.msra.mxu0 %v1463_v4  ;;  %v211_v14 = vld [vmem:[%s1962_s2 + $0x18] sm:$0xff]  ;;  %v61_v59 = vld [vmem:[#allocation5 + $0x10] sm:$0xff]  ;;  %v62_v60 = vld [vmem:[#allocation5 + $0x18] sm:$0xff]  ;;  %s1644_s20 = scalar_lea.vmem %s1231_s19, 1024  ;;  %p1649_p3 = scmp.lt.s32.totalorder %s1231_s19, %s1231_s19 }
  0x2c   :  { %1467 = vmatprep.subr.bf16.mxu1 %v1677_v11  ;;  %1479 = vmatprep.subr.bf16.mxu0 %v1677_v11  ;;  %v1774_v16 = vpack.c.bf16 %v211_v14, %v210_v13  ;;  %p1645_p2 = scmp.ne.s32.totalorder %s1231_s19, %s1644_s20  ;;  %p1650_p4 = scmp.lt.s32.totalorder %s1644_s20, %s1644_s20 }
  0x2e   :  { %1350 = vmatmul.mubr.msk.f32.vlgmr.msra.gmra.mrb[0].mxu1 %vm76_vm1, %v64_v8  ;;  %1344 = vmatmul.mubr.msk.f32.vlgmr.msra.gmra.mrb[0].mxu0 %vm76_vm1, %v60_v10  ;;  %v206_v17 = vld [vmem:[#allocation2] sm:$0xff]  ;;  %v207_v30 = vld [vmem:[#allocation3] sm:$0xff]  ;;  %p1651_p5 = por %p1650_p4, %p1649_p3 }
  0x2f   :  { %1469 = vmatpush3.bf16.msra.mxu1 %v1759_v9  ;;  %1352 = vmatprep.mubr.msk.f32.mxu1 %vm76_vm1, %v65_v12 }
  0x30   :  { %1470 = vmatprep.subr.bf16.mxu1 %v1677_v11  ;;  %1481 = vmatpush3.bf16.msra.mxu0 %v1759_v9  ;;  %p1652_p6 = pnand %p1651_p5, %p1645_p2 }
  0x31   :  { %1482 = vmatprep.subr.bf16.mxu0 %v1677_v11  ;;  %1346 = vmatprep.mubr.msk.f32.mxu0 %vm76_vm1, %v61_v59 }
  0x32   :  { %1353 = vmatmul.mubr.msk.f32.gmra.mrb[2].mxu1 %vm76_vm1, %v66_v15  ;;  %1347 = vmatmul.mubr.msk.f32.gmra.mrb[2].mxu0 %vm76_vm1, %v62_v60 }
  0x33   :  { %1472 = vmatpush3.bf16.msra.mxu1 %v1774_v16  ;;  %1363 = vmatprep.mubr.msk.f32.mxu1 %vm1678_vm2, %v1676_v0 }
  0x34   :  { %1473 = vmatprep.subr.bf16.mxu1 %v1677_v11  ;;  %1484 = vmatpush3.bf16.msra.mxu0 %v1774_v16 }
  0x35   :  { %1491 = vmatprep.subr.bf16.mxu0 %v1677_v11  ;;  %1385 = vmatprep.mubr.msk.f32.mxu0 %vm1678_vm2, %v1676_v0 }
  0x36   :  { %1364 = vmatmul.mubr.msk.f32.vlgmr.msra.gmra.mrb[4].mxu1 %vm56_vm0, %v206_v17 }
  0x37   :  { %1475 = vmatpush3.bf16.msra.mxu1 %v1759_v9  ;;  %1374 = vmatprep.mubr.msk.f32.mxu1 %vm1678_vm2, %v1676_v0 }
  0x38   :  { %1476 = vmatprep.subr.bf16.mxu1 %v1677_v11 }
  0x3b   :  { %1478 = vmatpush3.bf16.msra.mxu1 %v1774_v16 }
  0x3c   :  { %1485 = vmatprep.subr.bf16.mxu1 %v1677_v11 }
 0x101   :  { %v1793_v18 = vpop.f32.mrb[0].mxu1  ;;  %v1345_v19 = vpop.f32.mrb[0].mxu0 }
 0x102   :  { %v1795_v20 = vpop.f32.mrb[1].mxu1  ;;  %v167_v21 = vpop.f32.mrb[1].mxu0  ;;  %v173_v45 = vadd.f32 %v1345_v19, %v1800_v22 }
 0x103   :  { %v168_v25 = vadd.f32 %v1800_v22, %v167_v21 }
 0x105   :  { %v1802_v23 = vpop.f32.mrb[2].mxu1  ;;  %v1348_v1 = vpop.f32.mrb[2].mxu0 }
 0x106   :  { %v1804_v24 = vpop.f32.mrb[3].mxu1  ;;  %v177_v2 = vpop.f32.mrb[3].mxu0 }
 0x107   :  { %v178_v4 = vadd.f32 %v1800_v22, %v177_v2  ;;  %v193_v2 = vadd.f32 %v1793_v18, %v1800_v22 }
 0x109   :  { %v282_v26 = vpop.f32.mrb[4].mxu1 }
 0x10a   :  { %v286_v27 = vadd.f32 %v282_v26, %v168_v25  ;;  %v1365_v28 = vpop.f32.mrb[5].mxu1 }
 0x10c   :  { %1536 = vtanh.f32 %v286_v27  ;;  %v1253_v31 = vmul.f32 -1.442695, %v286_v27 }
 0x10e   :  { %1538 = vpow2.f32 %v1253_v31 }
 0x116   :  { %v1537_v29 = vpop.eup %1536 }
 0x117   :  { %300 = vrot.lane.b32.xlu0 %v1537_v29, %s1679_s30 }
 0x118   :  { %v1539_v32 = vpop.eup %1538 }
 0x119   :  { %v290_v33 = vadd.f32 1.0, %v1539_v32 }
 0x11b   :  { %295 = vrot.lane.b32.xlu0 %v207_v30, %s1680_s9  ;;  %1540 = vrcp.f32 %v290_v33  ;;  %v183_v30 = vadd.f32 %v1348_v1, %v1800_v22 }
 0x125   :  { %v1541_v34 = vpop.eup %1540 }
 0x189   :  { %v301_v35 = vpop.permute.xlu0 %300 }
 0x18a   :  { %v303_v36 = vmul.f32 %v1541_v34, %v301_v35 }
 0x18c   :  { %305 = vrot.lane.b32.xlu1 %v303_v36, %s1680_s9 }
 0x18d   :  { %v296_v37 = vpop.permute.xlu0 %295 }
 0x18e   :  { %v298_v38 = vmul.f32 %v1541_v34, %v296_v37 }
 0x1fe   :  { %v306_v39 = vpop.permute.xlu1 %305 }
 0x1ff   :  { %v308_v40 = vadd.f32 %v306_v39, %v298_v38 }
 0x201   :  { %1542 = vtanh.f32 %v308_v40 }
 0x20b   :  { %v1543_v41 = vpop.eup %1542 }
 0x20c   :  { %311 = vrot.lane.b32.xlu1 %v1543_v41, %s1679_s30 }
 0x27e   :  { %v312_v42 = vpop.permute.xlu1 %311 }
 0x27f   :  { %v314_v43 = vmul.f32 %v1541_v34, %v312_v42 }
 0x281   :  { %316 = vrot.lane.b32.xlu0 %v314_v43, %s1680_s9 }
 0x2f3   :  { %v317_v44 = vpop.permute.xlu0 %316 }
 0x2f4   :  { %319 = vst.msk [vmem:[#allocation4] sm:$0xff] %vm56_vm0, %v317_v44  ;;  %1375 = vmatmul.mubr.msk.f32.vlgmr.msra.gmra.mrb[6].mxu1 %vm56_vm0, %v317_v44 }
 0x2f5   :  { %1487 = vmatpush3.bf16.msra.mxu1 %v1759_v9  ;;  %1396 = vmatprep.mubr.msk.f32.mxu1 %vm1678_vm2, %v1676_v0 }
 0x2f6   :  { %1488 = vmatprep.subr.bf16.mxu1 %v1677_v11 }
 0x2f9   :  { %1490 = vmatpush3.bf16.msra.mxu1 %v1774_v16 }
 0x2fa   :  { %1497 = vmatprep.subr.bf16.mxu1 %v1677_v11 }
 0x3c7   :  { %v392_v46 = vpop.f32.mrb[6].mxu1 }
 0x3c8   :  { %v396_v47 = vadd.f32 %v392_v46, %v173_v45  ;;  %v1376_v48 = vpop.f32.mrb[7].mxu1 }
 0x3c9   :  { %v188_v48 = vadd.f32 %v1800_v22, %v1795_v20 }
 0x3ca   :  { %1544 = vtanh.f32 %v396_v47  ;;  %v1255_v50 = vmul.f32 -1.442695, %v396_v47 }
 0x3cc   :  { %1546 = vpow2.f32 %v1255_v50 }
 0x3d4   :  { %v1545_v49 = vpop.eup %1544 }
 0x3d5   :  { %406 = vrot.lane.b32.xlu1 %v1545_v49, %s1679_s30 }
 0x3d6   :  { %v1547_v51 = vpop.eup %1546 }
 0x3d7   :  { %v400_v52 = vadd.f32 1.0, %v1547_v51 }
 0x3d9   :  { %1548 = vrcp.f32 %v400_v52 }
 0x3e3   :  { %v1549_v53 = vpop.eup %1548 }
 0x3e4   :  { %v404_v56 = vmul.f32 %v1549_v53, %v308_v40 }
 0x447   :  { %v407_v54 = vpop.permute.xlu1 %406 }
 0x448   :  { %v409_v55 = vmul.f32 %v1549_v53, %v407_v54 }
 0x44a   :  { %411 = vrot.lane.b32.xlu0 %v409_v55, %s1680_s9 }
 0x4bc   :  { %v412_v57 = vpop.permute.xlu0 %411 }
 0x4bd   :  { %v414_v58 = vadd.f32 %v412_v57, %v404_v56 }
 0x4bf   :  { %1550 = vtanh.f32 %v414_v58 }
 0x4c9   :  { %v1551_v61 = vpop.eup %1550 }
 0x4ca   :  { %417 = vrot.lane.b32.xlu1 %v1551_v61, %s1679_s30 }
 0x53c   :  { %v418_v62 = vpop.permute.xlu1 %417 }
 0x53d   :  { %v420_v63 = vmul.f32 %v1549_v53, %v418_v62 }
 0x53f   :  { %422 = vrot.lane.b32.xlu0 %v420_v63, %s1680_s9 }
 0x5b1   :  { %v423_v3 = vpop.permute.xlu0 %422 }
 0x5b2   :  { %425 = vst.msk [vmem:[#allocation4 + $0x8] sm:$0xff] %vm56_vm0, %v423_v3  ;;  %1386 = vmatmul.mubr.msk.f32.vlgmr.msra.gmra.mrb[4].mxu0 %vm56_vm0, %v423_v3 }
 0x5b3   :  { %1493 = vmatpush3.bf16.msra.mxu0 %v1759_v9  ;;  %1407 = vmatprep.mubr.msk.f32.mxu0 %vm1678_vm2, %v1676_v0 }
 0x5b4   :  { %1494 = vmatprep.subr.bf16.mxu0 %v1677_v11 }
 0x5b7   :  { %1496 = vmatpush3.bf16.msra.mxu0 %v1774_v16 }
 0x5b8   :  { %1503 = vmatprep.subr.bf16.mxu0 %v1677_v11 }
 0x685   :  { %v498_v5 = vpop.f32.mrb[4].mxu0 }
 0x686   :  { %v502_v6 = vadd.f32 %v498_v5, %v178_v4  ;;  %v1387_v7 = vpop.f32.mrb[5].mxu0 }
 0x688   :  { %1552 = vtanh.f32 %v502_v6  ;;  %v1257_v10 = vmul.f32 -1.442695, %v502_v6 }
 0x68a   :  { %1554 = vpow2.f32 %v1257_v10 }
 0x692   :  { %v1553_v8 = vpop.eup %1552 }
 0x693   :  { %512 = vrot.lane.b32.xlu1 %v1553_v8, %s1679_s30 }
 0x694   :  { %v1555_v12 = vpop.eup %1554 }
 0x695   :  { %v506_v13 = vadd.f32 1.0, %v1555_v12 }
 0x697   :  { %1556 = vrcp.f32 %v506_v13  ;;  %v1076_v13 = vld [vmem:[%s1964_s4] sm:$0xff] }
 0x6a1   :  { %v1557_v14 = vpop.eup %1556 }
 0x6a2   :  { %v510_v19 = vmul.f32 %v1557_v14, %v414_v58 }
 0x705   :  { %v513_v15 = vpop.permute.xlu1 %512 }
 0x706   :  { %v515_v17 = vmul.f32 %v1557_v14, %v513_v15 }
 0x708   :  { %517 = vrot.lane.b32.xlu0 %v515_v17, %s1680_s9 }
 0x77a   :  { %v518_v21 = vpop.permute.xlu0 %517 }
 0x77b   :  { %v520_v25 = vadd.f32 %v518_v21, %v510_v19 }
 0x77d   :  { %1558 = vtanh.f32 %v520_v25 }
 0x787   :  { %v1559_v26 = vpop.eup %1558 }
 0x788   :  { %523 = vrot.lane.b32.xlu1 %v1559_v26, %s1679_s30  ;;  %v1079_v26 = vld [vmem:[%s1964_s4 + $0x18] sm:$0xff] }
 0x7fa   :  { %v524_v27 = vpop.permute.xlu1 %523 }
 0x7fb   :  { %v526_v28 = vmul.f32 %v1557_v14, %v524_v27  ;;  %v1077_v14 = vld [vmem:[%s1964_s4 + $0x8] sm:$0xff] }
 0x7fc   :  { %v1515_v15 = vpack.c.bf16 %v1077_v14, %v1076_v13 }
 0x7fd   :  { %528 = vrot.lane.b32.xlu0 %v526_v28, %s1680_s9 }
 0x86f   :  { %v529_v29 = vpop.permute.xlu0 %528 }
 0x870   :  { %531 = vst.msk [vmem:[#allocation4 + $0x10] sm:$0xff] %vm56_vm0, %v529_v29  ;;  %1397 = vmatmul.mubr.msk.f32.vlgmr.msra.gmra.mrb[8].mxu1 %vm56_vm0, %v529_v29  ;;  %v1068_v29 = vld [vmem:[#allocation4] sm:$0xff] }
 0x871   :  { %1499 = vmatpush3.bf16.msra.mxu1 %v1759_v9  ;;  %1418 = vmatprep.mubr.msk.f32.mxu1 %vm1678_vm2, %v1676_v0 }
 0x872   :  { %1500 = vmatprep.subr.bf16.mxu1 %v1677_v11 }
 0x875   :  { %1502 = vmatpush3.bf16.msra.mxu1 %v1774_v16 }
 0x876   :  { %1509 = vmatprep.subr.bf16.mxu1 %v1677_v11 }
 0x943   :  { %v604_v31 = vpop.f32.mrb[8].mxu1 }
 0x944   :  { %v608_v32 = vadd.f32 %v604_v31, %v183_v30  ;;  %v1398_v33 = vpop.f32.mrb[9].mxu1  ;;  %v1069_v30 = vld [vmem:[#allocation4 + $0x8] sm:$0xff]  ;;  %v1070_v31 = vld [vmem:[#allocation4 + $0x10] sm:$0xff] }
 0x946   :  { %1560 = vtanh.f32 %v608_v32  ;;  %v1259_v35 = vmul.f32 -1.442695, %v608_v32 }
 0x948   :  { %1562 = vpow2.f32 %v1259_v35  ;;  %v198_v35 = vadd.f32 %v1800_v22, %v1804_v24 }
 0x950   :  { %v1561_v34 = vpop.eup %1560 }
 0x951   :  { %618 = vrot.lane.b32.xlu1 %v1561_v34, %s1679_s30 }
 0x952   :  { %v1563_v36 = vpop.eup %1562 }
 0x953   :  { %v612_v37 = vadd.f32 1.0, %v1563_v36 }
 0x955   :  { %1564 = vrcp.f32 %v612_v37 }
 0x95f   :  { %v1565_v38 = vpop.eup %1564 }
 0x960   :  { %v616_v41 = vmul.f32 %v1565_v38, %v520_v25  ;;  %v1078_v25 = vld [vmem:[%s1964_s4 + $0x10] sm:$0xff] }
 0x961   :  { %v1519_v27 = vpack.c.bf16 %v1079_v26, %v1078_v25 }
 0x9c3   :  { %v619_v39 = vpop.permute.xlu1 %618 }
 0x9c4   :  { %v621_v40 = vmul.f32 %v1565_v38, %v619_v39  ;;  %v1909_v39 = vld [vmem:[%s1965_s5] ss:$0 sm:$0xff]  ;;  %s1681_s5 = smov 96  }
 0x9c6   :  { %623 = vrot.lane.b32.xlu0 %v621_v40, %s1680_s9 }
 0xa38   :  { %v624_v42 = vpop.permute.xlu0 %623 }
 0xa39   :  { %v626_v43 = vadd.f32 %v624_v42, %v616_v41 }
 0xa3b   :  { %1566 = vtanh.f32 %v626_v43 }
 0xa45   :  { %v1567_v44 = vpop.eup %1566 }
 0xa46   :  { %629 = vrot.lane.b32.xlu1 %v1567_v44, %s1679_s30 }
 0xab8   :  { %v630_v45 = vpop.permute.xlu1 %629 }
 0xab9   :  { %v632_v46 = vmul.f32 %v1565_v38, %v630_v45 }
 0xabb   :  { %634 = vrot.lane.b32.xlu0 %v632_v46, %s1680_s9 }
 0xb2d   :  { %v635_v47 = vpop.permute.xlu0 %634 }
 0xb2e   :  { %637 = vst.msk [vmem:[#allocation4 + $0x18] sm:$0xff] %vm56_vm0, %v635_v47  ;;  %1408 = vmatmul.mubr.msk.f32.vlgmr.msra.gmra.mrb[6].mxu0 %vm56_vm0, %v635_v47 }
 0xb2f   :  { %1505 = vmatpush3.bf16.msra.mxu0 %v1759_v9  ;;  %1429 = vmatprep.mubr.msk.f32.mxu0 %vm1678_vm2, %v1676_v0 }
 0xb30   :  { %1506 = vmatprep.subr.bf16.mxu0 %v1677_v11 }
 0xb33   :  { %1508 = vmatpush3.bf16.msra.mxu0 %v1774_v16 }
 0xb34   :  { %1516 = vmatprep.subr.bf16.mxu0 %v1515_v15 }
 0xb35   :  { %v1071_v32 = vld [vmem:[#allocation4 + $0x18] sm:$0xff] }
 0xc01   :  { %v710_v49 = vpop.f32.mrb[6].mxu0 }
 0xc02   :  { %v714_v50 = vadd.f32 %v710_v49, %v188_v48  ;;  %v1409_v51 = vpop.f32.mrb[7].mxu0 }
 0xc04   :  { %1568 = vtanh.f32 %v714_v50  ;;  %v1261_v53 = vmul.f32 -1.442695, %v714_v50 }
 0xc06   :  { %1570 = vpow2.f32 %v1261_v53 }
 0xc0e   :  { %v1569_v52 = vpop.eup %1568 }
 0xc0f   :  { %724 = vrot.lane.b32.xlu1 %v1569_v52, %s1679_s30 }
 0xc10   :  { %v1571_v54 = vpop.eup %1570 }
 0xc11   :  { %v718_v55 = vadd.f32 1.0, %v1571_v54 }
 0xc13   :  { %1572 = vrcp.f32 %v718_v55 }
 0xc1d   :  { %v1573_v56 = vpop.eup %1572 }
 0xc1e   :  { %v722_v59 = vmul.f32 %v1573_v56, %v626_v43 }
 0xc81   :  { %v725_v57 = vpop.permute.xlu1 %724 }
 0xc82   :  { %v727_v58 = vmul.f32 %v1573_v56, %v725_v57 }
 0xc84   :  { %729 = vrot.lane.b32.xlu0 %v727_v58, %s1680_s9 }
 0xcf6   :  { %v730_v60 = vpop.permute.xlu0 %729 }
 0xcf7   :  { %v732_v20 = vadd.f32 %v730_v60, %v722_v59 }
 0xcf9   :  { %1574 = vtanh.f32 %v732_v20 }
 0xd03   :  { %v1575_v61 = vpop.eup %1574 }
 0xd04   :  { %735 = vrot.lane.b32.xlu1 %v1575_v61, %s1679_s30 }
 0xd76   :  { %v736_v62 = vpop.permute.xlu1 %735 }
 0xd77   :  { %v738_v63 = vmul.f32 %v1573_v56, %v736_v62 }
 0xd79   :  { %740 = vrot.lane.b32.xlu0 %v738_v63, %s1680_s9 }
 0xdeb   :  { %v741_v1 = vpop.permute.xlu0 %740 }
 0xdec   :  { %743 = vst.msk [vmem:[#allocation4 + $0x20] sm:$0xff] %vm56_vm0, %v741_v1  ;;  %1419 = vmatmul.mubr.msk.f32.vlgmr.msra.gmra.mrb[10].mxu1 %vm56_vm0, %v741_v1 }
 0xded   :  { %1511 = vmatpush3.bf16.msra.mxu1 %v1759_v9  ;;  %1440 = vmatprep.mubr.msk.f32.mxu1 %vm1678_vm2, %v1676_v0 }
 0xdee   :  { %1512 = vmatprep.subr.bf16.mxu1 %v1677_v11 }
 0xdf1   :  { %1514 = vmatpush3.bf16.msra.mxu1 %v1774_v16 }
 0xdf3   :  { %v1072_v33 = vld [vmem:[#allocation4 + $0x20] sm:$0xff] }
 0xebf   :  { %v816_v3 = vpop.f32.mrb[10].mxu1 }
 0xec0   :  { %v820_v4 = vadd.f32 %v816_v3, %v193_v2  ;;  %v1420_v5 = vpop.f32.mrb[11].mxu1  ;;  %v203_v2 = vadd.f32 %v1802_v23, %v1800_v22 }
 0xec2   :  { %1576 = vtanh.f32 %v820_v4  ;;  %v1263_v7 = vmul.f32 -1.442695, %v820_v4 }
 0xec4   :  { %1578 = vpow2.f32 %v1263_v7 }
 0xecc   :  { %v1577_v6 = vpop.eup %1576 }
 0xecd   :  { %830 = vrot.lane.b32.xlu1 %v1577_v6, %s1679_s30 }
 0xece   :  { %v1579_v9 = vpop.eup %1578 }
 0xecf   :  { %v824_v8 = vadd.f32 1.0, %v1579_v9 }
 0xed1   :  { %1580 = vrcp.f32 %v824_v8 }
 0xedb   :  { %v1581_v0 = vpop.eup %1580 }
 0xedc   :  { %v828_v16 = vmul.f32 %v1581_v0, %v732_v20 }
 0xf3f   :  { %v831_v10 = vpop.permute.xlu1 %830 }
 0xf40   :  { %v833_v11 = vmul.f32 %v1581_v0, %v831_v10 }
 0xf42   :  { %835 = vrot.lane.b32.xlu0 %v833_v11, %s1680_s9 }
 0xfb4   :  { %v836_v12 = vpop.permute.xlu0 %835 }
 0xfb5   :  { %v1879_v18 = vadd.f32 %v836_v12, %v828_v16 }
 0xfb7   :  { %1582 = vtanh.f32 %v1879_v18 }
 0xfc1   :  { %v1583_v17 = vpop.eup %1582 }
 0xfc2   :  { %841 = vrot.lane.b32.xlu1 %v1583_v17, %s1679_s30 }
0x1034   :  { %v842_v19 = vpop.permute.xlu1 %841 }
0x1035   :  { %v844_v21 = vmul.f32 %v1581_v0, %v842_v19 }
0x1037   :  { %846 = vrot.lane.b32.xlu0 %v844_v21, %s1680_s9 }
0x10a9   :  { %v847_v28 = vpop.permute.xlu0 %846 }
0x10aa   :  { %849 = vst.msk [vmem:[#allocation4 + $0x28] sm:$0xff] %vm56_vm0, %v847_v28  ;;  %1430 = vmatmul.mubr.msk.f32.vlgmr.msra.gmra.mrb[8].mxu0 %vm56_vm0, %v847_v28 }
0x10ab   :  { %1518 = vmatpush3.bf16.msra.mxu0 %v1515_v15  ;;  %1451 = vmatprep.mubr.msk.f32.mxu0 %vm56_vm0, %v1068_v29 }
0x10ac   :  { %1520 = vmatprep.subr.bf16.mxu0 %v1519_v27 }
0x10af   :  { %1522 = vmatpush3.bf16.msra.mxu0 %v1519_v27 }
0x10b1   :  { %v1073_v34 = vld [vmem:[#allocation4 + $0x28] sm:$0xff] }
0x10b2   :  { %1452 = vmatmul.mubr.msk.f32.vlgmr.msra.gmra.mrb[10].mxu0 %vm56_vm0, %v1069_v30 }
0x10b3   :  { %1454 = vmatprep.mubr.msk.f32.mxu0 %vm56_vm0, %v1070_v31 }
0x10b6   :  { %1455 = vmatmul.mubr.msk.f32.gmra.mrb[12].mxu0 %vm56_vm0, %v1071_v32 }
0x10b7   :  { %1457 = vmatprep.mubr.msk.f32.mxu0 %vm56_vm0, %v1072_v33 }
0x10ba   :  { %1458 = vmatmul.mubr.msk.f32.gmra.mrb[14].mxu0 %vm56_vm0, %v1073_v34 }
0x117d   :  { %v922_v36 = vpop.f32.mrb[8].mxu0 }
0x117e   :  { %v926_v37 = vadd.f32 %v922_v36, %v198_v35  ;;  %v1431_v38 = vpop.f32.mrb[9].mxu0 }
0x1180   :  { %1584 = vtanh.f32 %v926_v37  ;;  %v1265_v52 = vmul.f32 -1.442695, %v926_v37 }
0x1182   :  { %1586 = vpow2.f32 %v1265_v52 }
0x1185   :  { %v1453_v40 = vpop.f32.mrb[10].mxu0 }
0x1186   :  { %v1183_v41 = vadd.f32 %v1453_v40, %v1909_v39  ;;  %v1177_v42 = vpop.f32.mrb[11].mxu0 }
0x1187   :  { %v1178_v43 = vadd.f32 %v1909_v39, %v1177_v42 }
0x1188   :  { %1218 = vst.msk [vmem:[#allocation10 + $0x8] sm:$0xff] %vm1216_vm3, %v1183_v41 }
0x1189   :  { %1217 = vst.msk [vmem:[#allocation10] sm:$0xff] %vm1216_vm3, %v1178_v43  ;;  %v1456_v24 = vpop.f32.mrb[12].mxu0 }
0x118a   :  { %v1585_v44 = vpop.eup %1584  ;;  %v1193_v45 = vadd.f32 %v1456_v24, %v1909_v39  ;;  %v1187_v46 = vpop.f32.mrb[13].mxu0 }
0x118b   :  { %v1188_v47 = vadd.f32 %v1909_v39, %v1187_v46  ;;  %936 = vrot.lane.b32.xlu1 %v1585_v44, %s1679_s30 }
0x118c   :  { %1220 = vst.msk [vmem:[#allocation10 + $0x18] sm:$0xff] %vm1216_vm3, %v1193_v45  ;;  %v1587_v53 = vpop.eup %1586 }
0x118d   :  { %1219 = vst.msk [vmem:[#allocation10 + $0x10] sm:$0xff] %vm1216_vm3, %v1188_v47  ;;  %v1459_v48 = vpop.f32.mrb[14].mxu0  ;;  %v930_v54 = vadd.f32 1.0, %v1587_v53 }
0x118e   :  { %v1203_v49 = vadd.f32 %v1459_v48, %v1909_v39  ;;  %v1197_v50 = vpop.f32.mrb[15].mxu0 }
0x118f   :  { %v1198_v51 = vadd.f32 %v1909_v39, %v1197_v50  ;;  %1588 = vrcp.f32 %v930_v54 }
0x1190   :  { %1222 = vst.msk [vmem:[#allocation10 + $0x28] sm:$0xff] %vm1216_vm3, %v1203_v49 }
0x1191   :  { %1221 = vst.msk [vmem:[#allocation10 + $0x20] sm:$0xff] %vm1216_vm3, %v1198_v51 }
0x1199   :  { %v1589_v55 = vpop.eup %1588 }
0x119a   :  { %v934_v58 = vmul.f32 %v1589_v55, %v1879_v18 }
0x11fd   :  { %v937_v56 = vpop.permute.xlu1 %936 }
0x11fe   :  { %v939_v57 = vmul.f32 %v1589_v55, %v937_v56 }
0x1200   :  { %941 = vrot.lane.b32.xlu0 %v939_v57, %s1680_s9 }
0x1272   :  { %v942_v59 = vpop.permute.xlu0 %941 }
0x1273   :  { %v944_v60 = vadd.f32 %v942_v59, %v934_v58 }
0x1275   :  { %1590 = vtanh.f32 %v944_v60 }
0x127f   :  { %v1591_v20 = vpop.eup %1590 }
0x1280   :  { %947 = vrot.lane.b32.xlu1 %v1591_v20, %s1679_s30 }
0x12f2   :  { %v948_v61 = vpop.permute.xlu1 %947 }
0x12f3   :  { %v950_v62 = vmul.f32 %v1589_v55, %v948_v61 }
0x12f5   :  { %952 = vrot.lane.b32.xlu0 %v950_v62, %s1680_s9 }
0x1367   :  { %v953_v63 = vpop.permute.xlu0 %952 }
0x1368   :  { %955 = vst.msk [vmem:[#allocation4 + $0x30] sm:$0xff] %vm56_vm0, %v953_v63  ;;  %1441 = vmatmul.mubr.msk.f32.vlgmr.msra.gmra.mrb[12].mxu1 %vm56_vm0, %v953_v63 }
0x136f   :  { %v1074_v1 = vld [vmem:[#allocation4 + $0x30] sm:$0xff] }
0x1370   :  { %1460 = vmatprep.mubr.msk.f32.mxu0 %vm56_vm0, %v1074_v1 }
0x143b   :  { %v1028_v3 = vpop.f32.mrb[12].mxu1 }
0x143c   :  { %v1032_v4 = vadd.f32 %v1028_v3, %v203_v2  ;;  %v1442_v5 = vpop.f32.mrb[13].mxu1 }
0x143e   :  { %1592 = vtanh.f32 %v1032_v4  ;;  %v1267_v7 = vmul.f32 -1.442695, %v1032_v4 }
0x1440   :  { %1594 = vpow2.f32 %v1267_v7 }
0x1448   :  { %v1593_v6 = vpop.eup %1592 }
0x1449   :  { %1042 = vrot.lane.b32.xlu1 %v1593_v6, %s1679_s30 }
0x144a   :  { %v1595_v9 = vpop.eup %1594 }
0x144b   :  { %v1036_v8 = vadd.f32 1.0, %v1595_v9 }
0x144d   :  { %1596 = vrcp.f32 %v1036_v8 }
0x1457   :  { %v1597_v0 = vpop.eup %1596 }
0x1458   :  { %v1040_v16 = vmul.f32 %v1597_v0, %v944_v60 }
0x14bb   :  { %v1043_v10 = vpop.permute.xlu1 %1042 }
0x14bc   :  { %v1045_v11 = vmul.f32 %v1597_v0, %v1043_v10 }
0x14be   :  { %1047 = vrot.lane.b32.xlu0 %v1045_v11, %s1680_s9 }
0x1530   :  { %v1048_v12 = vpop.permute.xlu0 %1047 }
0x1531   :  { %v1050_v22 = vadd.f32 %v1048_v12, %v1040_v16 }
0x1533   :  { %1598 = vtanh.f32 %v1050_v22 }
0x153d   :  { %v1599_v23 = vpop.eup %1598 }
0x153e   :  { %1053 = vrot.lane.b32.xlu1 %v1599_v23, %s1679_s30 }
0x1542   :  { %1064 = vrot.lane.b32.xlu1 %v1050_v22, %s1681_s5 }
0x15b0   :  { %v1054_v18 = vpop.permute.xlu1 %1053 }
0x15b1   :  { %v1056_v13 = vmul.f32 %v1597_v0, %v1054_v18 }
0x15b3   :  { %1058 = vrot.lane.b32.xlu0 %v1056_v13, %s1680_s9 }
0x15b4   :  { %v1065_v14 = vpop.permute.xlu1 %1064 }
0x15b5   :  { %1067 = vst.msk [vmem:[#allocation3] sm:$0xff] %vm56_vm0, %v1065_v14 }
0x1625   :  { %v1059_v15 = vpop.permute.xlu0 %1058 }
0x1626   :  { %1061 = vst.msk [vmem:[#allocation4 + $0x38] sm:$0xff] %vm56_vm0, %v1059_v15  ;;  %1062 = vst.msk [vmem:[#allocation2] sm:$0xff] %vm56_vm0, %v1059_v15 }
0x162d   :  { %v1075_v17 = vld [vmem:[#allocation4 + $0x38] sm:$0xff] }
0x162e   :  { %1461 = vmatmul.mubr.msk.f32.gmra.mrb[16].mxu0 %vm56_vm0, %v1075_v17 }
0x1701   :  { %v1462_v19 = vpop.f32.mrb[16].mxu0 }
0x1702   :  { %v1213_v21 = vadd.f32 %v1462_v19, %v1909_v39  ;;  %v1207_v25 = vpop.f32.mrb[17].mxu0 }
0x1703   :  { %v1208_v26 = vadd.f32 %v1909_v39, %v1207_v25 }
0x1704   :  { %1224 = vst.msk [vmem:[#allocation10 + $0x38] sm:$0xff] %vm1216_vm3, %v1213_v21 }
0x1705   :  { %1223 = vst.msk [vmem:[#allocation10 + $0x30] sm:$0xff] %vm1216_vm3, %v1208_v26 }
0x1706   :  { %1655 = shalt.err (!%p1652_p6)
}
0x1707   :  { %s1656_s1 = scalar_lea.hbm %s1966_s6, 1024 }
0x1708   :  { %p1657_p7 = scmp.ne.s32.totalorder %s1966_s6, %s1656_s1  ;;  %p1660_p8 = scmp.lt.u32.totalorder %s1656_s1, %s1966_s6 }
0x170a   :  { %p1662_p9 = pnand %p1660_p8, %p1657_p7 }
0x170c   :  { %1665 = shalt.err (!%p1662_p9)
}
0x170d   :  { %1236 = dma.vmem_to_hbm [thread:$0]  %s1231_s19, 1024, %s1966_s6, [#allocation7], %s1673_s7, %s1673_s7, %s1674_s8  }
0x170e   :  { %1670 = dma.done.wait [#allocation7], 1024  }
0x170f   :  { %1671 = vsyncadd [#allocation7], 4294966272 }
0x1710   :  { %1240 = vsyncpa [#allocation6], 1 }
0x1711   :  { %1241 = vsyncpa [#allocation9], 1 }
0x1712   :  { %1242 = vsyncpa [#allocation7], 1 }

</bundles_post_ra>
